<compile_context>
chip_gen: v5e
topology: v5e:2x2
jax: 0.10.0
libtpu: 0.0.40
codegen_flags: <defaults>
</compile_context>

<pallas_src>
import functools

import jax
import jax.numpy as jnp
from jax.experimental import pallas as pl
from jax.experimental.pallas import tpu as pltpu

HIDDEN_DIM = 256
OUTPUT_DIM = 128

# Large batch tile (multiple of 256 fills the MXU M dim on v6e/v7x and is a
# multiple of 8 for sublane tiling).  Small batches use one full-extent tile.
DEFAULT_TILE_B = 2048


def mlp_kernel(x_ref, w1_ref, b1_ref, w2_ref, b2_ref, w3_ref, b3_ref, o_ref):
    # In-kernel bf16 cast of x (VPU, hidden under MXU/DMA slots).
    x = x_ref[...].astype(jnp.bfloat16)
    # fc1 + ReLU   (bf16 operands, f32 accumulate, f32 element-wise)
    h = jnp.dot(x, w1_ref[...], preferred_element_type=jnp.float32)
    h = jnp.maximum(h + b1_ref[...], 0.0)
    # fc2 + ReLU
    h = jnp.dot(h.astype(w2_ref.dtype), w2_ref[...],
                preferred_element_type=jnp.float32)
    h = jnp.maximum(h + b2_ref[...], 0.0)
    # fc3 (no activation)
    out = jnp.dot(h.astype(w3_ref.dtype), w3_ref[...],
                  preferred_element_type=jnp.float32)
    o_ref[...] = (out + b3_ref[...]).astype(o_ref.dtype)


def _round_up(x, m):
    return ((x + m - 1) // m) * m


def _pick_tile_b(B, tile_b):
    # Small batch: one full-extent tile (splitting is pure per-step overhead).
    if B <= 512:
        return B
    # Large batch: at least 2 grid steps (v7x megacore sharding), tile a
    # multiple of 256, capped at tile_b.
    return min(tile_b, _round_up(pl.cdiv(B, 2), 256))


@functools.partial(jax.jit, static_argnames=("tile_b",))
def mlp_forward(x, w1, b1, w2, b2, w3, b3, *, tile_b=DEFAULT_TILE_B):
    """x: f32 (B, D_in); w*: bf16 (in, out); b*: f32 (1, out) -> f32 (B, D_out)."""
    B, D_in = x.shape
    D_h = w1.shape[1]
    D_out = w3.shape[1]

    tb = _pick_tile_b(B, tile_b)
    num_tiles = pl.cdiv(B, tb)

    # x / out move with the grid; weights & biases are resident (constant map).
    x_spec = pl.BlockSpec((tb, D_in), lambda i: (i, 0))
    o_spec = pl.BlockSpec((tb, D_out), lambda i: (i, 0))

    def resident(shape):
        return pl.BlockSpec(shape, lambda i: tuple(0 for _ in shape))

    flops = 2 * B * (D_in * D_h + D_h * D_h + D_h * D_out)
    bytes_accessed = (
        B * D_in * 4                                   # x (f32)
        + (D_in * D_h + D_h * D_h + D_h * D_out) * 2   # weights (bf16)
        + (D_h + D_h + D_out) * 4                      # biases (f32)
        + B * D_out * 4                                # output (f32)
    )

    return pl.pallas_call(
        mlp_kernel,
        out_shape=jax.ShapeDtypeStruct((B, D_out), jnp.float32),
        grid=(num_tiles,),
        in_specs=[
            x_spec,
            resident((D_in, D_h)), resident((1, D_h)),
            resident((D_h, D_h)), resident((1, D_h)),
            resident((D_h, D_out)), resident((1, D_out)),
        ],
        out_specs=o_spec,
        compiler_params=pltpu.CompilerParams(
            dimension_semantics=("parallel",),
        ),
        cost_estimate=pl.CostEstimate(
            flops=flops, transcendentals=0, bytes_accessed=bytes_accessed),
    )(x, w1, b1, w2, b2, w3, b3)


def init_linear(key, in_dim, out_dim):
    # Deterministic init mimicking nn.Linear's uniform(-1/sqrt(in), 1/sqrt(in)).
    kw, kb = jax.random.split(key)
    bound = 1.0 / jnp.sqrt(jnp.float32(in_dim))
    # Stored as (in_dim, out_dim) == W.T relative to PyTorch's (out, in).
    w = jax.random.uniform(kw, (in_dim, out_dim), jnp.float32, -bound, bound)
    b = jax.random.uniform(kb, (1, out_dim), jnp.float32, -bound, bound)
    return w, b


def prepare_params(w1, b1, w2, b2, w3, b3):
    # One-time (model-init) bf16 cast of the weights; biases stay f32.
    return (w1.astype(jnp.bfloat16), b1,
            w2.astype(jnp.bfloat16), b2,
            w3.astype(jnp.bfloat16), b3)


def _ref_f32(x, w1, b1, w2, b2, w3, b3):
    h = jnp.maximum(x @ w1 + b1, 0.0)
    h = jnp.maximum(h @ w2 + b2, 0.0)
    return h @ w3 + b3


def _ref_bf16(x, w1, b1, w2, b2, w3, b3):
    # Same bf16 matmul operands / f32 accumulation as the kernel.
    h = jnp.dot(x.astype(jnp.bfloat16), w1.astype(jnp.bfloat16),
                preferred_element_type=jnp.float32)
    h = jnp.maximum(h + b1, 0.0)
    h = jnp.dot(h.astype(jnp.bfloat16), w2.astype(jnp.bfloat16),
                preferred_element_type=jnp.float32)
    h = jnp.maximum(h + b2, 0.0)
    o = jnp.dot(h.astype(jnp.bfloat16), w3.astype(jnp.bfloat16),
                preferred_element_type=jnp.float32)
    return o + b3


if __name__ == "__main__":
    key = jax.random.PRNGKey(0)
    k_x, k1, k2, k3, k_x2 = jax.random.split(key, 5)

    batch = 8        # small toy shape: single full-extent tile
    input_dim = 32

    x = jax.random.normal(k_x, (batch, input_dim), jnp.float32)
    w1, b1 = init_linear(k1, input_dim, HIDDEN_DIM)
    w2, b2 = init_linear(k2, HIDDEN_DIM, HIDDEN_DIM)
    w3, b3 = init_linear(k3, HIDDEN_DIM, OUTPUT_DIM)
    params = prepare_params(w1, b1, w2, b2, w3, b3)

    out = mlp_forward(x, *params)
    out = jax.block_until_ready(out)
    assert out.shape == (batch, OUTPUT_DIM)
    assert out.dtype == jnp.float32

    # Reference with matching bf16 matmul operands / f32 accumulation.
    ref_lo = _ref_bf16(x, w1, b1, w2, b2, w3, b3)
    assert jnp.allclose(out, ref_lo, atol=1e-2, rtol=1e-2)

    # Full-f32 reference of the original module (loose tol for the bf16 cast).
    ref_hi = _ref_f32(x, w1, b1, w2, b2, w3, b3)
    assert jnp.allclose(out, ref_hi, atol=5e-2, rtol=5e-2)

    # Partial-last-block path: B not a multiple of the tile (exercises the
    # masked final grid step with no wrapper-side pad/slice).
    batch2 = 600
    x2 = jax.random.normal(k_x2, (batch2, input_dim), jnp.float32)
    out2 = jax.block_until_ready(mlp_forward(x2, *params, tile_b=256))
    assert out2.shape == (batch2, OUTPUT_DIM)
    ref2 = _ref_bf16(x2, w1, b1, w2, b2, w3, b3)
    assert jnp.allclose(out2, ref2, atol=1e-2, rtol=1e-2)

    print("KERNEL_OK")
</pallas_src>

<mosaic_0001>
module attributes {stable_mosaic.version = 11 : i64} {
  func.func @mlp_kernel(%arg0: i32, %arg1: memref<8x32xf32, #tpu.memory_space<vmem>>, %arg2: memref<32x256xbf16, #tpu.memory_space<vmem>>, %arg3: memref<1x256xf32, #tpu.memory_space<vmem>>, %arg4: memref<256x256xbf16, #tpu.memory_space<vmem>>, %arg5: memref<1x256xf32, #tpu.memory_space<vmem>>, %arg6: memref<256x128xbf16, #tpu.memory_space<vmem>>, %arg7: memref<1x128xf32, #tpu.memory_space<vmem>>, %arg8: memref<8x128xf32, #tpu.memory_space<vmem>>) attributes {dimension_semantics = [#tpu.dimension_semantics<parallel>], iteration_bounds = array<i64: 1>, scalar_prefetch = 0 : i64, scratch_operands = 0 : i64, tpu.core_type = #tpu.core_type<tc>, window_params = [{transform_indices = @transform_0, window_bounds = array<i64: 8, 32>}, {pipeline_mode = #tpu.pipeline_mode<synchronous>, transform_indices = @transform_1, window_bounds = array<i64: 32, 256>}, {pipeline_mode = #tpu.pipeline_mode<synchronous>, transform_indices = @transform_2, window_bounds = array<i64: 1, 256>}, {pipeline_mode = #tpu.pipeline_mode<synchronous>, transform_indices = @transform_3, window_bounds = array<i64: 256, 256>}, {pipeline_mode = #tpu.pipeline_mode<synchronous>, transform_indices = @transform_4, window_bounds = array<i64: 1, 256>}, {pipeline_mode = #tpu.pipeline_mode<synchronous>, transform_indices = @transform_5, window_bounds = array<i64: 256, 128>}, {pipeline_mode = #tpu.pipeline_mode<synchronous>, transform_indices = @transform_6, window_bounds = array<i64: 1, 128>}, {transform_indices = @transform_7, window_bounds = array<i64: 8, 128>}]} {
    %c0 = arith.constant 0 : index
    %c0_0 = arith.constant 0 : index
    %0 = vector.load %arg1[%c0, %c0_0] : memref<8x32xf32, #tpu.memory_space<vmem>>, vector<8x32xf32>
    %1 = arith.truncf %0 : vector<8x32xf32> to vector<8x32xbf16>
    %c0_1 = arith.constant 0 : index
    %c0_2 = arith.constant 0 : index
    %2 = vector.load %arg2[%c0_1, %c0_2] : memref<32x256xbf16, #tpu.memory_space<vmem>>, vector<32x256xbf16>
    %cst = arith.constant dense<0.000000e+00> : vector<8x256xf32>
    %3 = tpu.matmul %1, %2, %cst {dimension_numbers = #tpu.dot_dimension_numbers<[1], [0], [0], [1], [0, 0, 1, 1], [], []>} : vector<8x32xbf16>, vector<32x256xbf16>, vector<8x256xf32> -> vector<8x256xf32>
    %c0_3 = arith.constant 0 : index
    %c0_4 = arith.constant 0 : index
    %4 = vector.load %arg3[%c0_3, %c0_4] : memref<1x256xf32, #tpu.memory_space<vmem>>, vector<1x256xf32>
    %5 = vector.broadcast %4 : vector<1x256xf32> to vector<8x256xf32>
    %6 = arith.addf %3, %5 : vector<8x256xf32>
    %cst_5 = arith.constant 0.000000e+00 : f32
    %7 = vector.broadcast %cst_5 : f32 to vector<8x256xf32>
    %8 = arith.maximumf %6, %7 : vector<8x256xf32>
    %9 = arith.truncf %8 : vector<8x256xf32> to vector<8x256xbf16>
    %c0_6 = arith.constant 0 : index
    %c0_7 = arith.constant 0 : index
    %10 = vector.load %arg4[%c0_6, %c0_7] : memref<256x256xbf16, #tpu.memory_space<vmem>>, vector<256x256xbf16>
    %cst_8 = arith.constant dense<0.000000e+00> : vector<8x256xf32>
    %11 = tpu.matmul %9, %10, %cst_8 {dimension_numbers = #tpu.dot_dimension_numbers<[1], [0], [0], [1], [0, 0, 1, 1], [], []>} : vector<8x256xbf16>, vector<256x256xbf16>, vector<8x256xf32> -> vector<8x256xf32>
    %c0_9 = arith.constant 0 : index
    %c0_10 = arith.constant 0 : index
    %12 = vector.load %arg5[%c0_9, %c0_10] : memref<1x256xf32, #tpu.memory_space<vmem>>, vector<1x256xf32>
    %13 = vector.broadcast %12 : vector<1x256xf32> to vector<8x256xf32>
    %14 = arith.addf %11, %13 : vector<8x256xf32>
    %cst_11 = arith.constant 0.000000e+00 : f32
    %15 = vector.broadcast %cst_11 : f32 to vector<8x256xf32>
    %16 = arith.maximumf %14, %15 : vector<8x256xf32>
    %17 = arith.truncf %16 : vector<8x256xf32> to vector<8x256xbf16>
    %c0_12 = arith.constant 0 : index
    %c0_13 = arith.constant 0 : index
    %18 = vector.load %arg6[%c0_12, %c0_13] : memref<256x128xbf16, #tpu.memory_space<vmem>>, vector<256x128xbf16>
    %cst_14 = arith.constant dense<0.000000e+00> : vector<8x128xf32>
    %19 = tpu.matmul %17, %18, %cst_14 {dimension_numbers = #tpu.dot_dimension_numbers<[1], [0], [0], [1], [0, 0, 1, 1], [], []>} : vector<8x256xbf16>, vector<256x128xbf16>, vector<8x128xf32> -> vector<8x128xf32>
    %c0_15 = arith.constant 0 : index
    %c0_16 = arith.constant 0 : index
    %20 = vector.load %arg7[%c0_15, %c0_16] : memref<1x128xf32, #tpu.memory_space<vmem>>, vector<1x128xf32>
    %21 = vector.broadcast %20 : vector<1x128xf32> to vector<8x128xf32>
    %22 = arith.addf %19, %21 : vector<8x128xf32>
    %c0_17 = arith.constant 0 : index
    %c0_18 = arith.constant 0 : index
    %23 = vector.load %arg8[%c0_17, %c0_18] : memref<8x128xf32, #tpu.memory_space<vmem>>, vector<8x128xf32>
    tpu.vector_store %arg8[%c0_17, %c0_18], %22 {strides = array<i32>} : memref<8x128xf32, #tpu.memory_space<vmem>>, vector<8x128xf32>,
    return
  }
  func.func @transform_0(%arg0: i32) -> (i32, i32) {
    %c0_i32 = arith.constant 0 : i32
    %c0_i32_0 = arith.constant 0 : i32
    return %arg0, %c0_i32 : i32, i32
  }
  func.func @transform_1(%arg0: i32) -> (i32, i32) {
    %c0_i32 = arith.constant 0 : i32
    %c0_i32_0 = arith.constant 0 : i32
    %c0_i32_1 = arith.constant 0 : i32
    return %c0_i32, %c0_i32_0 : i32, i32
  }
  func.func @transform_2(%arg0: i32) -> (i32, i32) {
    %c0_i32 = arith.constant 0 : i32
    %c0_i32_0 = arith.constant 0 : i32
    %c0_i32_1 = arith.constant 0 : i32
    return %c0_i32, %c0_i32_0 : i32, i32
  }
  func.func @transform_3(%arg0: i32) -> (i32, i32) {
    %c0_i32 = arith.constant 0 : i32
    %c0_i32_0 = arith.constant 0 : i32
    %c0_i32_1 = arith.constant 0 : i32
    return %c0_i32, %c0_i32_0 : i32, i32
  }
  func.func @transform_4(%arg0: i32) -> (i32, i32) {
    %c0_i32 = arith.constant 0 : i32
    %c0_i32_0 = arith.constant 0 : i32
    %c0_i32_1 = arith.constant 0 : i32
    return %c0_i32, %c0_i32_0 : i32, i32
  }
  func.func @transform_5(%arg0: i32) -> (i32, i32) {
    %c0_i32 = arith.constant 0 : i32
    %c0_i32_0 = arith.constant 0 : i32
    %c0_i32_1 = arith.constant 0 : i32
    return %c0_i32, %c0_i32_0 : i32, i32
  }
  func.func @transform_6(%arg0: i32) -> (i32, i32) {
    %c0_i32 = arith.constant 0 : i32
    %c0_i32_0 = arith.constant 0 : i32
    %c0_i32_1 = arith.constant 0 : i32
    return %c0_i32, %c0_i32_0 : i32, i32
  }
  func.func @transform_7(%arg0: i32) -> (i32, i32) {
    %c0_i32 = arith.constant 0 : i32
    %c0_i32_0 = arith.constant 0 : i32
    return %arg0, %c0_i32 : i32, i32
  }
}

</mosaic_0001>

<bundles_post_ra>
// kernel: mlp_forward.1
= control target key start
LH: loop header
LB: loop body
LE: loop exit
PB: predicated region body
PF: predicated region fallthrough
CT: control target
= control target key end

     0   :  { %12 = vsyncpa [#allocation3], 0  ;;  %s1101_s0 = inlined_call_operand.hbm [shape: f32[8,32], index: 0, kind: input, shape index: {}]   ;;  %s1102_s1 = inlined_call_operand.hbm [shape: bf16[32,256], index: 1, kind: input, shape index: {}]   ;;  %s1103_s2 = inlined_call_operand.hbm [shape: f32[1,256], index: 2, kind: input, shape index: {}]   ;;  %s1104_s3 = inlined_call_operand.hbm [shape: bf16[256,256], index: 3, kind: input, shape index: {}]   ;;  %s1105_s4 = inlined_call_operand.vmem [shape: f32[1,256], index: 4, kind: input, shape index: {}]   ;;  %s1106_s5 = inlined_call_operand.hbm [shape: bf16[256,128], index: 5, kind: input, shape index: {}]   ;;  %s1107_s6 = inlined_call_operand.vmem [shape: f32[1,128], index: 6, kind: input, shape index: {}]   ;;  %s1108_s7 = inlined_call_operand.hbm [shape: f32[8,128], index: 7, kind: output, shape index: {}]  }
   0x1   :  { %13 = vsyncpa [#allocation6], 0 }
   0x2   :  { %14 = vsyncpa [#allocation9], 0  ;;  %s31_s26 = sshll.u32 %s1102_s1, 4  ;;  %s32_s26 = int_to_ptr.hbm [resolvable:$true] %s31_s26 }
   0x3   :  { %15 = vsyncpa [#allocation4], 0  ;;  %s1025_s27 = smov [#allocation5]   ;;  %s55_s8 = sshll.u32 %s1104_s3, 4  ;;  %s56_s8 = int_to_ptr.hbm [resolvable:$true] %s55_s8 }
   0x4   :  { %s33_s28 = sshll.u32 %s1025_s27, 4  ;;  %s1026_s9 = smov 128   ;;  %s34_s28 = int_to_ptr.vmem [resolvable:$true] %s33_s28 }
   0x5   :  { %s1027_s10 = smov 8   ;;  %s1028_s11 = smov [#allocation8]  }
   0x6   :  { %39 = dma.hbm_to_vmem [thread:$0]  %s32_s26, 512, %s34_s28, [#allocation6], %s1026_s9, %s1026_s9, %s1027_s10  }
   0x7   :  { %s57_s12 = sshll.u32 %s1028_s11, 4  ;;  %s21_s15 = sshll.u32 %s1101_s0, 4  ;;  %s58_s12 = int_to_ptr.vmem [resolvable:$true] %s57_s12  ;;  %s22_s15 = int_to_ptr.hbm [resolvable:$true] %s21_s15 }
   0x8   :  { %63 = dma.hbm_to_vmem [thread:$0]  %s56_s8, 4096, %s58_s12, [#allocation9], %s1026_s9, %s1026_s9, %s1027_s10  }
   0x9   :  { %s45_s17 = sshll.u32 %s1103_s2, 4  ;;  %s1029_s18 = smov [#allocation2]   ;;  %s46_s17 = int_to_ptr.hbm [resolvable:$true] %s45_s17 }
   0xa   :  { %s23_s19 = sshll.u32 %s1029_s18, 4  ;;  %s1030_s3 = smov [#allocation7]   ;;  %s24_s19 = int_to_ptr.vmem [resolvable:$true] %s23_s19 }
   0xb   :  { %26 = dma.hbm_to_vmem [thread:$0]  %s22_s15, 128, %s24_s19, [#allocation3]  }
   0xc   :  { %s47_s20 = sshll.u32 %s1030_s3, 4  ;;  %s70_s23 = sshll.u32 %s1106_s5, 4  ;;  %s48_s20 = int_to_ptr.vmem [resolvable:$true] %s47_s20  ;;  %s71_s23 = int_to_ptr.hbm [resolvable:$true] %s70_s23 }
   0xd   :  { %50 = dma.hbm_to_vmem [thread:$0]  %s46_s17, 32, %s48_s20, [#allocation6]  }
   0xe   :  { %s1031_s0 = smov [#allocation10]   ;;  %s1032_s25 = smov 64  }
   0xf   :  { %s72_s24 = sshll.u32 %s1031_s0, 4  ;;  %s1033_s26 = smov 4   ;;  %s73_s24 = int_to_ptr.vmem [resolvable:$true] %s72_s24 }
  0x10   :  { %78 = dma.hbm_to_vmem [thread:$0]  %s71_s23, 2048, %s73_s24, [#allocation9], %s1032_s25, %s1032_s25, %s1033_s26  }
  0x11   :  { %1017 = dma.done.wait [#allocation3], 128  }
  0x12   :  { %1018 = vsyncadd [#allocation3], 4294967168 }
  0x13   :  { %1019 = dma.done.wait [#allocation6], 544  }
  0x14   :  { %1020 = vsyncadd [#allocation6], 4294966752 }
  0x15   :  { %1021 = dma.done.wait [#allocation9], 6144  }
  0x16   :  { %1022 = vsyncadd [#allocation9], 4294961152  ;;  %v610_v0 = vld [vmem:[#allocation5 + $0x10] sm:$0xf]  ;;  %v813_v1 = vld [vmem:[#allocation5 + $0x14] sm:$0xf0] }
  0x17   :  { %v812_v2 = vld [vmem:[#allocation5 + $0x14] sm:$0xf]  ;;  %v611_v3 = vor.u32 %v813_v1, %v610_v0  ;;  %v612_v4 = vld [vmem:[#allocation5 + $0x18] sm:$0xf0]  ;;  %v602_v5 = vld [vmem:[#allocation5] sm:$0xf] }
  0x18   :  { %v811_v6 = vld [vmem:[#allocation5 + $0x4] sm:$0xf0]  ;;  %v615_v7 = vor.u32 %v812_v2, %v612_v4  ;;  %v810_v8 = vld [vmem:[#allocation5 + $0x4] sm:$0xf]  ;;  %v604_v9 = vld [vmem:[#allocation5 + $0x8] sm:$0xf0] }
  0x19   :  { %v102_v10 = vld [vmem:[#allocation2] sm:$0xff]  ;;  %vm134_vm0 = vcmask 261120   ;;  %144 = vmatpush.bf16.msra.mxu0 %v611_v3  ;;  %v603_v11 = vor.u32 %v811_v6, %v602_v5  ;;  %v676_v12 = vld [vmem:[#allocation8 + $0x70] sm:$0xf]  ;;  %v607_v15 = vor.u32 %v810_v8, %v604_v9  ;;  %v668_v24 = vld [vmem:[#allocation8 + $0x60] sm:$0xf] }
  0x1a   :  { %v829_v13 = vld [vmem:[#allocation8 + $0x74] sm:$0xf0]  ;;  %v740_v14 = vld [vmem:[#allocation8 + $0xf0] sm:$0xf]  ;;  %157 = vmatpush.bf16.msra.mxu1 %v615_v7  ;;  %v828_v18 = vld [vmem:[#allocation8 + $0x74] sm:$0xf]  ;;  %v103_v25 = vpack.c.bf16 %v102_v10, %v102_v10 }
  0x1b   :  { %v677_v16 = vor.u32 %v829_v13, %v676_v12  ;;  %v845_v17 = vld [vmem:[#allocation8 + $0xf4] sm:$0xf0]  ;;  %v678_v19 = vld [vmem:[#allocation8 + $0x78] sm:$0xf0]  ;;  %v844_v22 = vld [vmem:[#allocation8 + $0xf4] sm:$0xf] }
  0x1c   :  { %v741_v20 = vor.u32 %v845_v17, %v740_v14  ;;  %v681_v21 = vor.u32 %v828_v18, %v678_v19  ;;  %v742_v23 = vld [vmem:[#allocation8 + $0xf8] sm:$0xf0]  ;;  %v827_v27 = vld [vmem:[#allocation8 + $0x64] sm:$0xf0]  ;;  %v732_v28 = vld [vmem:[#allocation8 + $0xe0] sm:$0xf] }
  0x1d   :  { %366 = vmatpush.bf16.msra.mxu2 %v677_v16  ;;  %v745_v26 = vor.u32 %v844_v22, %v742_v23  ;;  %v843_v29 = vld [vmem:[#allocation8 + $0xe4] sm:$0xf0]  ;;  %145 = vmatpush.bf16.msra.mxu0 %v603_v11  ;;  %v669_v30 = vor.u32 %v827_v27, %v668_v24  ;;  %v826_v32 = vld [vmem:[#allocation8 + $0x64] sm:$0xf]  ;;  %v670_v33 = vld [vmem:[#allocation8 + $0x68] sm:$0xf0] }
  0x1e   :  { %379 = vmatpush.bf16.msra.mxu3 %v741_v20  ;;  %v733_v31 = vor.u32 %v843_v29, %v732_v28  ;;  %v842_v34 = vld [vmem:[#allocation8 + $0xe4] sm:$0xf]  ;;  %158 = vmatpush.bf16.msra.mxu1 %v607_v15  ;;  %v673_v35 = vor.u32 %v826_v32, %v670_v33  ;;  %v734_v36 = vld [vmem:[#allocation8 + $0xe8] sm:$0xf0]  ;;  %v660_v37 = vld [vmem:[#allocation8 + $0x50] sm:$0xf] }
  0x1f   :  { %v825_v38 = vld [vmem:[#allocation8 + $0x54] sm:$0xf0]  ;;  %v737_v39 = vor.u32 %v842_v34, %v734_v36  ;;  %v724_v40 = vld [vmem:[#allocation8 + $0xd0] sm:$0xf]  ;;  %v824_v42 = vld [vmem:[#allocation8 + $0x54] sm:$0xf] }
  0x20   :  { %v841_v41 = vld [vmem:[#allocation8 + $0xd4] sm:$0xf0]  ;;  %616 = vmatmul.msk.bf16.vlgmr.msra.gmra.mxu0 %vm134_vm0, %v103_v25  ;;  %v661_v43 = vor.u32 %v825_v38, %v660_v37  ;;  %v662_v44 = vld [vmem:[#allocation8 + $0x58] sm:$0xf0]  ;;  %v840_v45 = vld [vmem:[#allocation8 + $0xd4] sm:$0xf] }
  0x21   :  { %392 = vmatpush.bf16.msrb.mxu0 %v681_v21  ;;  %367 = vmatpush.bf16.msra.mxu2 %v669_v30  ;;  %v726_v46 = vld [vmem:[#allocation8 + $0xd8] sm:$0xf0]  ;;  %v725_v47 = vor.u32 %v841_v41, %v724_v40  ;;  %v652_v48 = vld [vmem:[#allocation8 + $0x40] sm:$0xf]  ;;  %v823_v49 = vld [vmem:[#allocation8 + $0x44] sm:$0xf0]  ;;  %v665_v50 = vor.u32 %v824_v42, %v662_v44 }
  0x22   :  { %405 = vmatpush.bf16.msrb.mxu1 %v745_v26  ;;  %380 = vmatpush.bf16.msra.mxu3 %v733_v31  ;;  %v716_v51 = vld [vmem:[#allocation8 + $0xc0] sm:$0xf]  ;;  %v839_v52 = vld [vmem:[#allocation8 + $0xc4] sm:$0xf0]  ;;  %v729_v53 = vor.u32 %v840_v45, %v726_v46  ;;  %v822_v54 = vld [vmem:[#allocation8 + $0x44] sm:$0xf]  ;;  %v653_v56 = vor.u32 %v823_v49, %v652_v48 }
  0x23   :  { %617 = vmatmul.msk.bf16.vlgmr.msra.gmra.mxu1 %vm134_vm0, %v103_v25  ;;  %v654_v55 = vld [vmem:[#allocation8 + $0x48] sm:$0xf0]  ;;  %v838_v57 = vld [vmem:[#allocation8 + $0xc4] sm:$0xf]  ;;  %v717_v59 = vor.u32 %v839_v52, %v716_v51  ;;  %v644_v60 = vld [vmem:[#allocation8 + $0x30] sm:$0xf] }
  0x24   :  { %v718_v58 = vld [vmem:[#allocation8 + $0xc8] sm:$0xf0]  ;;  %v821_v61 = vld [vmem:[#allocation8 + $0x34] sm:$0xf0]  ;;  %v657_v62 = vor.u32 %v822_v54, %v654_v55  ;;  %v708_v63 = vld [vmem:[#allocation8 + $0xb0] sm:$0xf] }
  0x25   :  { %393 = vmatpush.bf16.msrb.mxu0 %v673_v35  ;;  %368 = vmatpush.bf16.msra.mxu2 %v661_v43  ;;  %v837_v0 = vld [vmem:[#allocation8 + $0xb4] sm:$0xf0]  ;;  %v721_v1 = vor.u32 %v838_v57, %v718_v58  ;;  %v820_v2 = vld [vmem:[#allocation8 + $0x34] sm:$0xf]  ;;  %v646_v3 = vld [vmem:[#allocation8 + $0x38] sm:$0xf0]  ;;  %v645_v4 = vor.u32 %v821_v61, %v644_v60 }
  0x26   :  { %406 = vmatpush.bf16.msrb.mxu1 %v737_v39  ;;  %381 = vmatpush.bf16.msra.mxu3 %v725_v47  ;;  %v836_v5 = vld [vmem:[#allocation8 + $0xb4] sm:$0xf]  ;;  %v710_v6 = vld [vmem:[#allocation8 + $0xb8] sm:$0xf0]  ;;  %v709_v7 = vor.u32 %v837_v0, %v708_v63  ;;  %v636_v8 = vld [vmem:[#allocation8 + $0x20] sm:$0xf]  ;;  %v649_v10 = vor.u32 %v820_v2, %v646_v3 }
  0x27   :  { %v819_v9 = vld [vmem:[#allocation8 + $0x24] sm:$0xf0]  ;;  %v700_v11 = vld [vmem:[#allocation8 + $0xa0] sm:$0xf]  ;;  %v713_v13 = vor.u32 %v836_v5, %v710_v6  ;;  %v818_v14 = vld [vmem:[#allocation8 + $0x24] sm:$0xf] }
  0x28   :  { %v835_v12 = vld [vmem:[#allocation8 + $0xa4] sm:$0xf0]  ;;  %v638_v15 = vld [vmem:[#allocation8 + $0x28] sm:$0xf0]  ;;  %v637_v16 = vor.u32 %v819_v9, %v636_v8  ;;  %v834_v17 = vld [vmem:[#allocation8 + $0xa4] sm:$0xf] }
  0x29   :  { %394 = vmatpush.bf16.msrb.mxu0 %v665_v50  ;;  %369 = vmatpush.bf16.msra.mxu2 %v653_v56  ;;  %v702_v18 = vld [vmem:[#allocation8 + $0xa8] sm:$0xf0]  ;;  %v701_v19 = vor.u32 %v835_v12, %v700_v11  ;;  %v641_v20 = vor.u32 %v818_v14, %v638_v15  ;;  %v628_v22 = vld [vmem:[#allocation8 + $0x10] sm:$0xf]  ;;  %v817_v23 = vld [vmem:[#allocation8 + $0x14] sm:$0xf0] }
  0x2a   :  { %407 = vmatpush.bf16.msrb.mxu1 %v729_v53  ;;  %382 = vmatpush.bf16.msra.mxu3 %v717_v59  ;;  %v705_v21 = vor.u32 %v834_v17, %v702_v18  ;;  %v692_v24 = vld [vmem:[#allocation8 + $0x90] sm:$0xf]  ;;  %v629_v25 = vor.u32 %v817_v23, %v628_v22  ;;  %v833_v26 = vld [vmem:[#allocation8 + $0x94] sm:$0xf0]  ;;  %v816_v27 = vld [vmem:[#allocation8 + $0x14] sm:$0xf] }
  0x2b   :  { %v630_v28 = vld [vmem:[#allocation8 + $0x18] sm:$0xf0]  ;;  %v693_v29 = vor.u32 %v833_v26, %v692_v24  ;;  %v832_v31 = vld [vmem:[#allocation8 + $0x94] sm:$0xf]  ;;  %v620_v34 = vld [vmem:[#allocation8] sm:$0xf] }
  0x2c   :  { %v633_v30 = vor.u32 %v816_v27, %v630_v28  ;;  %v694_v32 = vld [vmem:[#allocation8 + $0x98] sm:$0xf0]  ;;  %v815_v35 = vld [vmem:[#allocation8 + $0x4] sm:$0xf0]  ;;  %v684_v36 = vld [vmem:[#allocation8 + $0x80] sm:$0xf] }
  0x2d   :  { %395 = vmatpush.bf16.msrb.mxu0 %v657_v62  ;;  %370 = vmatpush.bf16.msra.mxu2 %v645_v4  ;;  %v697_v33 = vor.u32 %v832_v31, %v694_v32  ;;  %v621_v37 = vor.u32 %v815_v35, %v620_v34  ;;  %v831_v38 = vld [vmem:[#allocation8 + $0x84] sm:$0xf0]  ;;  %v814_v39 = vld [vmem:[#allocation8 + $0x4] sm:$0xf]  ;;  %v622_v40 = vld [vmem:[#allocation8 + $0x8] sm:$0xf0] }
  0x2e   :  { %408 = vmatpush.bf16.msrb.mxu1 %v721_v1  ;;  %383 = vmatpush.bf16.msra.mxu3 %v709_v7  ;;  %v685_v41 = vor.u32 %v831_v38, %v684_v36  ;;  %v625_v42 = vor.u32 %v814_v39, %v622_v40  ;;  %v830_v43 = vld [vmem:[#allocation8 + $0x84] sm:$0xf]  ;;  %v686_v44 = vld [vmem:[#allocation8 + $0x88] sm:$0xf0]  ;;  %v861_v46 = vld [vmem:[#allocation10 + $0x78] sm:$0xff]  ;;  %s1034_s28 = smov [#allocation11]  }
  0x2f   :  { %v689_v45 = vor.u32 %v830_v43, %v686_v44  ;;  %v853_v47 = vld [vmem:[#allocation10 + $0x38] sm:$0xff]  ;;  %v860_v48 = vld [vmem:[#allocation10 + $0x70] sm:$0xff]  ;;  %v859_v50 = vld [vmem:[#allocation10 + $0x68] sm:$0xff]  ;;  %s586_s29 = sshll.u32 %s1034_s28, 4  ;;  %s588_s9 = sshll.u32 %s1108_s7, 4  ;;  %s587_s29 = int_to_ptr.vmem [resolvable:$true] %s586_s29  ;;  %s589_s9 = int_to_ptr.hbm [resolvable:$true] %s588_s9 }
  0x30   :  { %v852_v49 = vld [vmem:[#allocation10 + $0x30] sm:$0xff]  ;;  %v851_v51 = vld [vmem:[#allocation10 + $0x28] sm:$0xff]  ;;  %v858_v52 = vld [vmem:[#allocation10 + $0x60] sm:$0xff] }
  0x31   :  { %396 = vmatpush.bf16.msrb.mxu0 %v649_v10  ;;  %371 = vmatpush.bf16.msra.mxu2 %v637_v16  ;;  %v850_v53 = vld [vmem:[#allocation10 + $0x20] sm:$0xff]  ;;  %v857_v54 = vld [vmem:[#allocation10 + $0x58] sm:$0xff]  ;;  %v856_v56 = vld [vmem:[#allocation10 + $0x50] sm:$0xff] }
  0x32   :  { %409 = vmatpush.bf16.msrb.mxu1 %v713_v13  ;;  %384 = vmatpush.bf16.msra.mxu3 %v701_v19  ;;  %v108_v55 = vld [vmem:[#allocation7] sm:$0x3]  ;;  %v855_v6 = vld [vmem:[#allocation10 + $0x48] sm:$0xff]  ;;  %v848_v7 = vld [vmem:[#allocation10 + $0x10] sm:$0xff] }
  0x33   :  { %v110_v57 = vperm.slane %v108_v55, 0  ;;  %v111_v58 = vperm.slane %v108_v55, 1  ;;  %v849_v5 = vld [vmem:[#allocation10 + $0x18] sm:$0xff]  ;;  %v854_v8 = vld [vmem:[#allocation10 + $0x40] sm:$0xff]  ;;  %v847_v9 = vld [vmem:[#allocation10 + $0x8] sm:$0xff] }
  0x34   :  { %v846_v10 = vld [vmem:[#allocation10] sm:$0xff]  ;;  %v200_v11 = vld [vmem:[%s1105_s4] sm:$0x3] }
  0x35   :  { %397 = vmatpush.bf16.msrb.mxu0 %v641_v20  ;;  %372 = vmatpush.bf16.msra.mxu2 %v629_v25  ;;  %v203_v12 = vperm.slane %v200_v11, 1  ;;  %v202_v17 = vperm.slane %v200_v11, 0  ;;  %v872_v31 = vld [vmem:[%s1107_s6] ss:$0 sm:$0xff] }
  0x36   :  { %410 = vmatpush.bf16.msrb.mxu1 %v705_v21  ;;  %385 = vmatpush.bf16.msra.mxu3 %v693_v29 }
  0x39   :  { %398 = vmatpush.bf16.msrb.mxu0 %v633_v30  ;;  %373 = vmatpush.bf16.msra.mxu2 %v621_v37 }
  0x3a   :  { %411 = vmatpush.bf16.msrb.mxu1 %v697_v33  ;;  %386 = vmatpush.bf16.msra.mxu3 %v685_v41 }
  0x3d   :  { %399 = vmatpush.bf16.msrb.mxu0 %v625_v42  ;;  %554 = vmatpush.bf16.msrb.mxu2 %v853_v47 }
  0x3e   :  { %412 = vmatpush.bf16.msrb.mxu1 %v689_v45  ;;  %567 = vmatpush.bf16.msrb.mxu3 %v861_v46 }
  0x41   :  { %555 = vmatpush.bf16.msrb.mxu2 %v852_v49 }
  0x42   :  { %568 = vmatpush.bf16.msrb.mxu3 %v860_v48 }
  0x45   :  { %556 = vmatpush.bf16.msrb.mxu2 %v851_v51 }
  0x46   :  { %569 = vmatpush.bf16.msrb.mxu3 %v859_v50 }
  0x49   :  { %557 = vmatpush.bf16.msrb.mxu2 %v850_v53 }
  0x4a   :  { %570 = vmatpush.bf16.msrb.mxu3 %v858_v52 }
  0x4d   :  { %558 = vmatpush.bf16.msrb.mxu2 %v849_v5 }
  0x4e   :  { %571 = vmatpush.bf16.msrb.mxu3 %v857_v54 }
  0x51   :  { %559 = vmatpush.bf16.msrb.mxu2 %v848_v7 }
  0x52   :  { %572 = vmatpush.bf16.msrb.mxu3 %v856_v56 }
  0x55   :  { %560 = vmatpush.bf16.msrb.mxu2 %v847_v9 }
  0x56   :  { %573 = vmatpush.bf16.msrb.mxu3 %v855_v6 }
  0x59   :  { %561 = vmatpush.bf16.msrb.mxu2 %v846_v10 }
  0x5a   :  { %574 = vmatpush.bf16.msrb.mxu3 %v854_v8 }
  0x9d   :  { %v147_v59 = vpop.f32.mrf.mxu0 }
  0x9e   :  { %v148_v60 = vadd.f32 %v147_v59, %v110_v57 }
  0xa0   :  { %v160_v61 = vpop.f32.mrf.mxu1  ;;  %v164_v63 = vmax.f32 %v148_v60, 0.0 }
  0xa1   :  { %v161_v62 = vadd.f32 %v160_v61, %v111_v58 }
  0xa2   :  { %v166_v1 = vpack.c.bf16 %v164_v63, %v164_v63 }
  0xa3   :  { %v165_v0 = vmax.f32 %v161_v62, 0.0 }
  0xa4   :  { %374 = vmatmul.bf16.vlgmr.msra.gmra.mxu2 %v166_v1  ;;  %400 = vmatmul.bf16.vlgmr.msrb.gmra.mxu0 %v166_v1 }
  0xa5   :  { %v167_v2 = vpack.c.bf16 %v165_v0, %v165_v0  ;;  %v149_v3 = vpop.f32.mrf.mxu0 }
  0xa7   :  { %387 = vmatmul.bf16.vlgmr.msra.gmra.mxu3 %v167_v2  ;;  %413 = vmatmul.bf16.vlgmr.msrb.gmra.mxu1 %v167_v2 }
  0xa8   :  { %v162_v4 = vpop.f32.mrf.mxu1 }
 0x121   :  { %v401_v13 = vpop.f32.mrf.mxu0 }
 0x122   :  { %v402_v14 = vadd.f32 %v401_v13, %v203_v12 }
 0x124   :  { %v414_v15 = vpop.f32.mrf.mxu1 }
 0x125   :  { %v415_v16 = vadd.f32 %v414_v15, %v402_v14 }
 0x127   :  { %v419_v18 = vmax.f32 %v415_v16, 0.0  ;;  %v375_v19 = vpop.f32.mrf.mxu2 }
 0x128   :  { %v376_v21 = vadd.f32 %v375_v19, %v202_v17 }
 0x129   :  { %v421_v20 = vpack.c.bf16 %v419_v18, %v419_v18  ;;  %v403_v23 = vpop.f32.mrf.mxu0 }
 0x12a   :  { %v388_v22 = vpop.f32.mrf.mxu3 }
 0x12b   :  { %v389_v24 = vadd.f32 %v388_v22, %v376_v21  ;;  %575 = vmatmul.bf16.vlgmr.msrb.gmra.mxu3 %v421_v20 }
 0x12c   :  { %v416_v25 = vpop.f32.mrf.mxu1 }
 0x12d   :  { %v418_v26 = vmax.f32 %v389_v24, 0.0 }
 0x12f   :  { %v420_v27 = vpack.c.bf16 %v418_v26, %v418_v26  ;;  %v377_v28 = vpop.f32.mrf.mxu2 }
 0x131   :  { %562 = vmatmul.bf16.vlgmr.msrb.gmra.mxu2 %v420_v27 }
 0x132   :  { %v390_v29 = vpop.f32.mrf.mxu3 }
 0x1ae   :  { %v576_v30 = vpop.f32.mrf.mxu3 }
 0x1b4   :  { %v563_v32 = vpop.f32.mrf.mxu2 }
 0x1b5   :  { %v564_v33 = vadd.f32 %v872_v31, %v563_v32 }
 0x1b6   :  { %v578_v34 = vpop.f32.mrf.mxu3 }
 0x1b7   :  { %v577_v35 = vadd.f32 %v576_v30, %v564_v33 }
 0x1b9   :  { %580 = vst [vmem:[#allocation11] sm:$0xff] %v577_v35 }
 0x1ba   :  { %591 = dma.vmem_to_hbm [thread:$0]  %s587_s29, 128, %s589_s9, [#allocation4]  }
 0x1bc   :  { %v565_v36 = vpop.f32.mrf.mxu2 }
 0x1bd   :  { %1023 = dma.done.wait [#allocation4], 128  }
 0x1be   :  { %1024 = vsyncadd [#allocation4], 4294967168 }
 0x1bf   :  { %596 = vsyncpa [#allocation3], 1 }
 0x1c0   :  { %597 = vsyncpa [#allocation6], 1 }
 0x1c1   :  { %598 = vsyncpa [#allocation9], 1 }
 0x1c2   :  { %599 = vsyncpa [#allocation4], 1 }

</bundles_post_ra>
